<compile_context>
chip_gen: v7x
topology: tpu7x:2x2x1
jax: 0.10.0
libtpu: 0.0.40
codegen_flags: <defaults>
</compile_context>

<pallas_src>
import math
from functools import partial

import numpy as np
import jax
import jax.numpy as jnp
from jax.experimental import pallas as pl
from jax.experimental.pallas import tpu as pltpu


def _round_up(x, m):
    return ((x + m - 1) // m) * m


def _vmem_limit_bytes():
    """Scoped-VMEM limit sized per TPU generation (v5e/v6e: 128 MiB physical,
    v7x: 64 MiB).  Falls back to a v7x-safe 32 MiB if the query fails."""
    phys = 64 * 1024 * 1024
    try:
        fn = getattr(pltpu, "get_tpu_info", None)
        if fn is not None:
            info = fn()
            for attr in ("vmem_capacity_bytes", "vmem_bytes", "vmem_size_bytes"):
                v = getattr(info, attr, None)
                if v:
                    phys = int(v)
                    break
    except Exception:
        pass
    return min(phys // 2, 64 * 1024 * 1024)


# ----------------------------------------------------------------------------
# Conv 3x3 / stride 2, fused direct conv (pad (0,1,0,1) like torch F.pad)
# ----------------------------------------------------------------------------
def _make_conv_kernel(tq, OW, KC):
    def kernel(xe_ref, xo_ref, xe1_ref, w_ref, b_ref, o_ref, xs_ref):
        # xe_ref  : (tq, Wq, KC) even input rows 2*oh       -> kh = 0 taps
        # xo_ref  : (tq, Wq, KC) odd  input rows 2*oh + 1   -> kh = 1 taps
        # xe1_ref : (tq, Wq, KC) even rows of the NEXT q-block; only row 0 is
        #           needed to complete the kh = 2 taps of the last output row.
        # KC = 2*C fuses the column parity into the contraction dim, so the
        # kw taps become two contiguous sublane slices (no strided gathers).
        if tq > 1:
            xs_ref[0:tq - 1] = xe_ref[1:tq]        # input rows 2*oh + 2
        xs_ref[tq - 1:tq] = xe1_ref[0:1]

        acc = None
        for kh, rows in enumerate((xe_ref[...], xo_ref[...], xs_ref[...])):
            lo = rows[:, 0:OW, :].reshape(tq * OW, KC)       # cols 2*ow + {0,1}
            hi = rows[:, 1:OW + 1, :].reshape(tq * OW, KC)   # cols 2*ow + {2,3}; 3 hits zero weights
            part = jnp.dot(lo, w_ref[2 * kh], preferred_element_type=jnp.float32)
            part = part + jnp.dot(hi, w_ref[2 * kh + 1], preferred_element_type=jnp.float32)
            acc = part if acc is None else acc + part
        o_ref[...] = (acc + b_ref[...]).astype(o_ref.dtype)

    return kernel


def _conv3x3_s2(x, weight, bias, compute_dtype, out_layout):
    N, C, H, W = x.shape
    C_out = weight.shape[0]
    OH = (H - 2) // 2 + 1            # = ((H+1) - 3)//2 + 1 with torch pad (0,1,0,1)
    OW = (W - 2) // 2 + 1
    Wq = OW + 1                      # column pairs needed per output row
    KC = 2 * C                       # (column-parity, channel) contraction dim
    Cop = _round_up(C_out, 128)      # lane-dense output stores

    cdt = x.dtype if compute_dtype is None else jnp.dtype(compute_dtype)
    out_dtype = x.dtype
    csize = jnp.dtype(cdt).itemsize
    osize = jnp.dtype(out_dtype).itemsize

    # ---- generation-aware tile sizing ---------------------------------------
    vmem_limit = _vmem_limit_bytes()
    budget = int(vmem_limit * 0.6)
    align = 8 // math.gcd(OW, 8)     # keep tq*OW a multiple of 8 (aligned stores)
    per_tq = (3 * 2 * Wq * KC * csize        # 3 input specs, double-buffered
              + 2 * OW * Cop * osize         # output block, double-buffered
              + OW * Cop * 4)                # f32 accumulator
    fixed = 2 * (6 * KC * Cop * csize) + 2 * Cop * 4
    if budget > fixed + align * per_tq:
        tq = max(align, ((budget - fixed) // per_tq) // align * align)
    else:
        tq = align
    tq = min(tq, _round_up(OH, align), 512)
    # keep >= 2 parallel grid blocks when possible (v7x has 2 TensorCores)
    while N * (-(-OH // tq)) < 2 and tq > align:
        tq = max(align, (tq // 2) // align * align)

    OHp = _round_up(OH, tq)
    nblocks = OHp // tq
    Qp = OHp + tq                    # one extra q-block so the "i+1" spec stays in range

    # ---- operands (single fused cast/transpose/pad pass; reshape is free) ----
    x_nhwc = jnp.transpose(x.astype(cdt), (0, 2, 3, 1))
    xp = jnp.pad(x_nhwc, ((0, 0), (0, 2 * Qp - H), (0, 2 * Wq - W), (0, 0)))
    xr = xp.reshape(N, Qp, 2, Wq, KC)   # [n, q, row-parity, wq, col-parity*C + c]

    wt = jnp.transpose(weight, (2, 3, 1, 0))                      # (3,3,C,C_out)
    zeros = jnp.zeros((C, C_out), wt.dtype)
    w_lo = jnp.stack([jnp.concatenate([wt[kh, 0], wt[kh, 1]], axis=0) for kh in range(3)])
    w_hi = jnp.stack([jnp.concatenate([wt[kh, 2], zeros], axis=0) for kh in range(3)])
    wmat = jnp.stack([w_lo, w_hi], axis=1).reshape(6, KC, C_out)  # [2*kh + {lo,hi}]
    wmat = jnp.pad(wmat, ((0, 0), (0, 0), (0, Cop - C_out))).astype(cdt)
    b2d = jnp.pad(bias.astype(jnp.float32).reshape(1, C_out), ((0, 0), (0, Cop - C_out)))

    M = N * OHp * OW
    cost = pl.CostEstimate(
        flops=2 * M * (6 * KC) * Cop,
        transcendentals=0,
        bytes_accessed=int(1.5 * N * Qp * 2 * Wq * KC * csize)
        + int(wmat.size) * csize + M * Cop * osize,
    )

    vin = (None, tq, None, Wq, KC)
    out2d = pl.pallas_call(
        _make_conv_kernel(tq, OW, KC),
        out_shape=jax.ShapeDtypeStruct((M, Cop), out_dtype),
        grid_spec=pltpu.PrefetchScalarGridSpec(
            num_scalar_prefetch=0,
            grid=(N, nblocks),
            in_specs=[
                pl.BlockSpec(vin, lambda n, i: (n, i, 0, 0, 0)),       # kh=0 rows
                pl.BlockSpec(vin, lambda n, i: (n, i, 1, 0, 0)),       # kh=1 rows
                pl.BlockSpec(vin, lambda n, i: (n, i + 1, 0, 0, 0)),   # kh=2 boundary row
                pl.BlockSpec((6, KC, Cop), lambda n, i: (0, 0, 0)),    # resident weights
                pl.BlockSpec((1, Cop), lambda n, i: (0, 0)),           # resident bias
            ],
            out_specs=pl.BlockSpec((tq * OW, Cop),
                                   lambda n, i: (n * nblocks + i, 0)),
            scratch_shapes=[pltpu.VMEM((tq, Wq, KC), cdt)],
        ),
        compiler_params=pltpu.CompilerParams(
            dimension_semantics=("parallel", "parallel"),
            vmem_limit_bytes=vmem_limit,
        ),
        cost_estimate=cost,
    )(xr, xr, xr, wmat, b2d)

    out = out2d.reshape(N, OHp, OW, Cop)[:, :OH, :, :C_out]       # NHWC, lane-dense
    if out_layout == "NHWC":
        return out
    # TODO(synk): at realistic sizes prefer out_layout="NHWC" and fuse this
    # transpose into the consumer; kept for PyTorch NCHW parity.
    return jnp.transpose(out, (0, 3, 1, 2))


# ----------------------------------------------------------------------------
# avg_pool2d(kernel=2, stride=2)
# ----------------------------------------------------------------------------
def _avgpool_kernel(x_ref, p_ref, o_ref):
    o_ref[...] = jnp.dot(x_ref[...], p_ref[...],
                         preferred_element_type=jnp.float32).astype(o_ref.dtype)


def _pick_row_tile(rows, cap):
    """Largest tile <= cap that is a multiple of 8 and divides `rows`; falls
    back to the full extent for small problems or to padding `rows` to 8."""
    cap = max(8, min(cap, 2048))
    if rows <= cap:
        t = (rows // 8) * 8
        while t >= 8:
            if rows % t == 0:
                return t, rows
            t -= 8
        return rows, rows            # full-extent block (allowed even if < 8)
    t = (cap // 8) * 8
    while t >= 8:
        if rows % t == 0:
            return t, rows
        t -= 8
    rows_p = _round_up(rows, 8)
    t = (cap // 8) * 8
    while rows_p % t != 0:
        t -= 8
    return t, rows_p


def _avgpool2x2(x):
    N, C, H, W = x.shape
    OH, OW = H // 2, W // 2
    # torch avg_pool2d(k=2, s=2) floors: drop a trailing odd row / column.
    x = x[:, :, :2 * OH, :2 * OW]
    R = N * C * OH
    RWrow = 4 * OW                              # [even row | odd row] of one output row
    x2 = x.reshape(R, RWrow)                    # free reshape of contiguous NCHW

    # Lane-dense output: group g output rows per block so store width >= 128.
    g = 1 if OW >= 128 else -(-128 // OW)
    RW, CW = g * RWrow, g * OW

    isz = x.dtype.itemsize
    vmem_limit = _vmem_limit_bytes()
    budget = int(vmem_limit * 0.6)
    p_bytes = 2 * RW * CW * isz
    per_row = 2 * RW * isz + 2 * CW * isz
    cap = max(8, (budget - p_bytes) // max(per_row, 1))
    Rg = -(-R // g)
    tr, Rg_pad = _pick_row_tile(Rg, cap)

    if Rg_pad * g != R:
        x2 = jnp.pad(x2, ((0, Rg_pad * g - R), (0, 0)))
    x2g = x2.reshape(Rg_pad, RW)

    # Block-diagonal 0.25 pooling matrix (g*4*OW, g*OW): row-pair sum and
    # column-pair average folded into one MXU matmul (mem-bound op, MXU idle).
    j = jnp.arange(RWrow)
    base = (((j % (2 * OW)) // 2)[:, None] == jnp.arange(OW)[None, :])
    base = base.astype(x.dtype) * 0.25
    pool = jnp.kron(jnp.eye(g, dtype=x.dtype), base)

    out2d = pl.pallas_call(
        _avgpool_kernel,
        out_shape=jax.ShapeDtypeStruct((Rg_pad, CW), x.dtype),
        grid_spec=pltpu.PrefetchScalarGridSpec(
            num_scalar_prefetch=0,
            grid=(Rg_pad // tr,),
            in_specs=[
                pl.BlockSpec((tr, RW), lambda i: (i, 0)),
                pl.BlockSpec((RW, CW), lambda i: (0, 0)),
            ],
            out_specs=pl.BlockSpec((tr, CW), lambda i: (i, 0)),
        ),
        compiler_params=pltpu.CompilerParams(
            dimension_semantics=("parallel",),
            vmem_limit_bytes=vmem_limit,
        ),
    )(x2g, pool)

    y = out2d[:Rg].reshape(Rg * g, OW)[:R]
    return y.reshape(N, C, OH, OW)              # already NCHW, no transpose


# ----------------------------------------------------------------------------
# Module-facing wrapper (PyTorch Downsample.forward semantics, NCHW)
# ----------------------------------------------------------------------------
@partial(jax.jit, static_argnames=("with_conv", "compute_dtype", "out_layout"))
def downsample(x, weight=None, bias=None, *, with_conv=True,
               compute_dtype=jnp.bfloat16, out_layout="NCHW"):
    """Pallas Downsample forward.  x: (N, C, H, W).

    compute_dtype defaults to bfloat16 (f32 MXU accumulation); pass None for a
    pure-f32 path.  out_layout="NHWC" skips the final transpose for fused
    channels-last consumers.
    """
    if with_conv:
        return _conv3x3_s2(x, weight, bias, compute_dtype, out_layout)
    return _avgpool2x2(x)


if __name__ == "__main__":
    key = jax.random.PRNGKey(0)
    k_x, k_w, k_b = jax.random.split(key, 3)

    N, C, H, W = 2, 4, 16, 16
    x = jax.random.normal(k_x, (N, C, H, W), dtype=jnp.float32)

    # Conv2d(C, C, kernel_size=3, stride=2) parameters, PyTorch-style uniform init.
    fan_in = C * 3 * 3
    bound = 1.0 / np.sqrt(fan_in)
    weight = jax.random.uniform(k_w, (C, C, 3, 3), minval=-bound, maxval=bound,
                                dtype=jnp.float32)
    bias = jax.random.uniform(k_b, (C,), minval=-bound, maxval=bound,
                              dtype=jnp.float32)

    y_conv_bf16 = downsample(x, weight, bias, with_conv=True)                    # bf16 MXU (default)
    y_conv_f32 = downsample(x, weight, bias, with_conv=True, compute_dtype=None)
    y_pool = downsample(x, with_conv=False)
    jax.block_until_ready((y_conv_bf16, y_conv_f32, y_pool))

    # References (pure JAX) to verify semantics.
    xp = jnp.pad(x, ((0, 0), (0, 0), (0, 1), (0, 1)))
    y_conv_ref = jax.lax.conv_general_dilated(
        xp, weight, window_strides=(2, 2), padding="VALID",
        dimension_numbers=("NCHW", "OIHW", "NCHW"),
    ) + bias.reshape(1, C, 1, 1)
    y_pool_ref = x.reshape(N, C, H // 2, 2, W // 2, 2).mean(axis=(3, 5))

    assert y_conv_f32.shape == (N, C, H // 2, W // 2), y_conv_f32.shape
    assert y_conv_bf16.shape == (N, C, H // 2, W // 2), y_conv_bf16.shape
    assert y_pool.shape == (N, C, H // 2, W // 2), y_pool.shape
    assert jnp.allclose(y_conv_f32, y_conv_ref, atol=2e-4, rtol=2e-4), \
        float(jnp.max(jnp.abs(y_conv_f32 - y_conv_ref)))
    assert jnp.allclose(y_conv_bf16, y_conv_ref, atol=3e-2, rtol=3e-2), \
        float(jnp.max(jnp.abs(y_conv_bf16 - y_conv_ref)))
    assert jnp.allclose(y_pool, y_pool_ref, atol=1e-4, rtol=1e-4), \
        float(jnp.max(jnp.abs(y_pool - y_pool_ref)))
    print("KERNEL_OK")
</pallas_src>

<mosaic_0001>
module attributes {stable_mosaic.version = 11 : i64} {
  func.func @kernel(%arg0: i32, %arg1: i32, %arg2: memref<1x8x1x9x8xbf16, #tpu.memory_space<vmem>>, %arg3: memref<1x8x1x9x8xbf16, #tpu.memory_space<vmem>>, %arg4: memref<1x8x1x9x8xbf16, #tpu.memory_space<vmem>>, %arg5: memref<6x8x128xbf16, #tpu.memory_space<vmem>>, %arg6: memref<1x128xf32, #tpu.memory_space<vmem>>, %arg7: memref<64x128xf32, #tpu.memory_space<vmem>>, %arg8: memref<8x9x8xbf16, #tpu.memory_space<vmem>>) attributes {dimension_semantics = [#tpu.dimension_semantics<parallel>, #tpu.dimension_semantics<parallel>], iteration_bounds = array<i64: 2, 1>, scalar_prefetch = 0 : i64, scratch_operands = 1 : i64, tpu.core_type = #tpu.core_type<tc>, window_params = [{transform_indices = @transform_0, window_bounds = array<i64: 1, 8, 1, 9, 8>}, {transform_indices = @transform_1, window_bounds = array<i64: 1, 8, 1, 9, 8>}, {transform_indices = @transform_2, window_bounds = array<i64: 1, 8, 1, 9, 8>}, {pipeline_mode = #tpu.pipeline_mode<synchronous>, transform_indices = @transform_3, window_bounds = array<i64: 6, 8, 128>}, {pipeline_mode = #tpu.pipeline_mode<synchronous>, transform_indices = @transform_4, window_bounds = array<i64: 1, 128>}, {transform_indices = @transform_5, window_bounds = array<i64: 64, 128>}]} {
    %c0 = arith.constant 0 : index
    %c1 = arith.constant 1 : index
    %c0_0 = arith.constant 0 : index
    %c0_1 = arith.constant 0 : index
    %c0_2 = arith.constant 0 : index
    %0 = vector.load %arg2[%c0, %c1, %c0_0, %c0_1, %c0_2] : memref<1x8x1x9x8xbf16, #tpu.memory_space<vmem>>, vector<1x7x1x9x8xbf16>
    %1 = vector.shape_cast %0 : vector<1x7x1x9x8xbf16> to vector<7x9x8xbf16>
    %c0_3 = arith.constant 0 : index
    %c0_4 = arith.constant 0 : index
    %c0_5 = arith.constant 0 : index
    %2 = vector.load %arg8[%c0_3, %c0_4, %c0_5] : memref<8x9x8xbf16, #tpu.memory_space<vmem>>, vector<7x9x8xbf16>
    tpu.vector_store %arg8[%c0_3, %c0_4, %c0_5], %1 {strides = array<i32>} : memref<8x9x8xbf16, #tpu.memory_space<vmem>>, vector<7x9x8xbf16>,
    %c0_6 = arith.constant 0 : index
    %c0_7 = arith.constant 0 : index
    %c0_8 = arith.constant 0 : index
    %c0_9 = arith.constant 0 : index
    %c0_10 = arith.constant 0 : index
    %3 = vector.load %arg4[%c0_6, %c0_7, %c0_8, %c0_9, %c0_10] : memref<1x8x1x9x8xbf16, #tpu.memory_space<vmem>>, vector<1x1x1x9x8xbf16>
    %4 = vector.shape_cast %3 : vector<1x1x1x9x8xbf16> to vector<1x9x8xbf16>
    %c7 = arith.constant 7 : index
    %c0_11 = arith.constant 0 : index
    %c0_12 = arith.constant 0 : index
    %5 = vector.load %arg8[%c7, %c0_11, %c0_12] : memref<8x9x8xbf16, #tpu.memory_space<vmem>>, vector<1x9x8xbf16>
    tpu.vector_store %arg8[%c7, %c0_11, %c0_12], %4 {strides = array<i32>} : memref<8x9x8xbf16, #tpu.memory_space<vmem>>, vector<1x9x8xbf16>,
    %c0_13 = arith.constant 0 : index
    %c0_14 = arith.constant 0 : index
    %c0_15 = arith.constant 0 : index
    %c0_16 = arith.constant 0 : index
    %c0_17 = arith.constant 0 : index
    %6 = vector.load %arg2[%c0_13, %c0_14, %c0_15, %c0_16, %c0_17] : memref<1x8x1x9x8xbf16, #tpu.memory_space<vmem>>, vector<1x8x1x9x8xbf16>
    %7 = vector.shape_cast %6 : vector<1x8x1x9x8xbf16> to vector<8x9x8xbf16>
    %c0_18 = arith.constant 0 : index
    %c0_19 = arith.constant 0 : index
    %c0_20 = arith.constant 0 : index
    %c0_21 = arith.constant 0 : index
    %c0_22 = arith.constant 0 : index
    %8 = vector.load %arg3[%c0_18, %c0_19, %c0_20, %c0_21, %c0_22] : memref<1x8x1x9x8xbf16, #tpu.memory_space<vmem>>, vector<1x8x1x9x8xbf16>
    %9 = vector.shape_cast %8 : vector<1x8x1x9x8xbf16> to vector<8x9x8xbf16>
    %c0_23 = arith.constant 0 : index
    %c0_24 = arith.constant 0 : index
    %c0_25 = arith.constant 0 : index
    %10 = vector.load %arg8[%c0_23, %c0_24, %c0_25] : memref<8x9x8xbf16, #tpu.memory_space<vmem>>, vector<8x9x8xbf16>
    %11 = vector.extract_strided_slice %7 {offsets = [0, 0, 0], sizes = [8, 8, 8], strides = [1, 1, 1]} : vector<8x9x8xbf16> to vector<8x8x8xbf16>
    %12 = vector.shape_cast %11 : vector<8x8x8xbf16> to vector<64x8xbf16>
    %13 = vector.extract_strided_slice %7 {offsets = [0, 1, 0], sizes = [8, 8, 8], strides = [1, 1, 1]} : vector<8x9x8xbf16> to vector<8x8x8xbf16>
    %14 = vector.shape_cast %13 : vector<8x8x8xbf16> to vector<64x8xbf16>
    %c0_26 = arith.constant 0 : index
    %c0_27 = arith.constant 0 : index
    %c0_28 = arith.constant 0 : index
    %15 = vector.load %arg5[%c0_26, %c0_27, %c0_28] : memref<6x8x128xbf16, #tpu.memory_space<vmem>>, vector<1x8x128xbf16>
    %16 = vector.shape_cast %15 : vector<1x8x128xbf16> to vector<8x128xbf16>
    %cst = arith.constant dense<0.000000e+00> : vector<64x128xf32>
    %17 = tpu.matmul %12, %16, %cst {dimension_numbers = #tpu.dot_dimension_numbers<[1], [0], [0], [1], [0, 0, 1, 1], [], []>} : vector<64x8xbf16>, vector<8x128xbf16>, vector<64x128xf32> -> vector<64x128xf32>
    %c1_29 = arith.constant 1 : index
    %c0_30 = arith.constant 0 : index
    %c0_31 = arith.constant 0 : index
    %18 = vector.load %arg5[%c1_29, %c0_30, %c0_31] : memref<6x8x128xbf16, #tpu.memory_space<vmem>>, vector<1x8x128xbf16>
    %19 = vector.shape_cast %18 : vector<1x8x128xbf16> to vector<8x128xbf16>
    %cst_32 = arith.constant dense<0.000000e+00> : vector<64x128xf32>
    %20 = tpu.matmul %14, %19, %cst_32 {dimension_numbers = #tpu.dot_dimension_numbers<[1], [0], [0], [1], [0, 0, 1, 1], [], []>} : vector<64x8xbf16>, vector<8x128xbf16>, vector<64x128xf32> -> vector<64x128xf32>
    %21 = arith.addf %17, %20 : vector<64x128xf32>
    %22 = vector.extract_strided_slice %9 {offsets = [0, 0, 0], sizes = [8, 8, 8], strides = [1, 1, 1]} : vector<8x9x8xbf16> to vector<8x8x8xbf16>
    %23 = vector.shape_cast %22 : vector<8x8x8xbf16> to vector<64x8xbf16>
    %24 = vector.extract_strided_slice %9 {offsets = [0, 1, 0], sizes = [8, 8, 8], strides = [1, 1, 1]} : vector<8x9x8xbf16> to vector<8x8x8xbf16>
    %25 = vector.shape_cast %24 : vector<8x8x8xbf16> to vector<64x8xbf16>
    %c2 = arith.constant 2 : index
    %c0_33 = arith.constant 0 : index
    %c0_34 = arith.constant 0 : index
    %26 = vector.load %arg5[%c2, %c0_33, %c0_34] : memref<6x8x128xbf16, #tpu.memory_space<vmem>>, vector<1x8x128xbf16>
    %27 = vector.shape_cast %26 : vector<1x8x128xbf16> to vector<8x128xbf16>
    %cst_35 = arith.constant dense<0.000000e+00> : vector<64x128xf32>
    %28 = tpu.matmul %23, %27, %cst_35 {dimension_numbers = #tpu.dot_dimension_numbers<[1], [0], [0], [1], [0, 0, 1, 1], [], []>} : vector<64x8xbf16>, vector<8x128xbf16>, vector<64x128xf32> -> vector<64x128xf32>
    %c3 = arith.constant 3 : index
    %c0_36 = arith.constant 0 : index
    %c0_37 = arith.constant 0 : index
    %29 = vector.load %arg5[%c3, %c0_36, %c0_37] : memref<6x8x128xbf16, #tpu.memory_space<vmem>>, vector<1x8x128xbf16>
    %30 = vector.shape_cast %29 : vector<1x8x128xbf16> to vector<8x128xbf16>
    %cst_38 = arith.constant dense<0.000000e+00> : vector<64x128xf32>
    %31 = tpu.matmul %25, %30, %cst_38 {dimension_numbers = #tpu.dot_dimension_numbers<[1], [0], [0], [1], [0, 0, 1, 1], [], []>} : vector<64x8xbf16>, vector<8x128xbf16>, vector<64x128xf32> -> vector<64x128xf32>
    %32 = arith.addf %28, %31 : vector<64x128xf32>
    %33 = arith.addf %21, %32 : vector<64x128xf32>
    %34 = vector.extract_strided_slice %10 {offsets = [0, 0, 0], sizes = [8, 8, 8], strides = [1, 1, 1]} : vector<8x9x8xbf16> to vector<8x8x8xbf16>
    %35 = vector.shape_cast %34 : vector<8x8x8xbf16> to vector<64x8xbf16>
    %36 = vector.extract_strided_slice %10 {offsets = [0, 1, 0], sizes = [8, 8, 8], strides = [1, 1, 1]} : vector<8x9x8xbf16> to vector<8x8x8xbf16>
    %37 = vector.shape_cast %36 : vector<8x8x8xbf16> to vector<64x8xbf16>
    %c4 = arith.constant 4 : index
    %c0_39 = arith.constant 0 : index
    %c0_40 = arith.constant 0 : index
    %38 = vector.load %arg5[%c4, %c0_39, %c0_40] : memref<6x8x128xbf16, #tpu.memory_space<vmem>>, vector<1x8x128xbf16>
    %39 = vector.shape_cast %38 : vector<1x8x128xbf16> to vector<8x128xbf16>
    %cst_41 = arith.constant dense<0.000000e+00> : vector<64x128xf32>
    %40 = tpu.matmul %35, %39, %cst_41 {dimension_numbers = #tpu.dot_dimension_numbers<[1], [0], [0], [1], [0, 0, 1, 1], [], []>} : vector<64x8xbf16>, vector<8x128xbf16>, vector<64x128xf32> -> vector<64x128xf32>
    %c5 = arith.constant 5 : index
    %c0_42 = arith.constant 0 : index
    %c0_43 = arith.constant 0 : index
    %41 = vector.load %arg5[%c5, %c0_42, %c0_43] : memref<6x8x128xbf16, #tpu.memory_space<vmem>>, vector<1x8x128xbf16>
    %42 = vector.shape_cast %41 : vector<1x8x128xbf16> to vector<8x128xbf16>
    %cst_44 = arith.constant dense<0.000000e+00> : vector<64x128xf32>
    %43 = tpu.matmul %37, %42, %cst_44 {dimension_numbers = #tpu.dot_dimension_numbers<[1], [0], [0], [1], [0, 0, 1, 1], [], []>} : vector<64x8xbf16>, vector<8x128xbf16>, vector<64x128xf32> -> vector<64x128xf32>
    %44 = arith.addf %40, %43 : vector<64x128xf32>
    %45 = arith.addf %33, %44 : vector<64x128xf32>
    %c0_45 = arith.constant 0 : index
    %c0_46 = arith.constant 0 : index
    %46 = vector.load %arg6[%c0_45, %c0_46] : memref<1x128xf32, #tpu.memory_space<vmem>>, vector<1x128xf32>
    %47 = vector.broadcast %46 : vector<1x128xf32> to vector<64x128xf32>
    %48 = arith.addf %45, %47 : vector<64x128xf32>
    %c0_47 = arith.constant 0 : index
    %c0_48 = arith.constant 0 : index
    %49 = vector.load %arg7[%c0_47, %c0_48] : memref<64x128xf32, #tpu.memory_space<vmem>>, vector<64x128xf32>
    tpu.vector_store %arg7[%c0_47, %c0_48], %48 {strides = array<i32>} : memref<64x128xf32, #tpu.memory_space<vmem>>, vector<64x128xf32>,
    return
  }
  func.func @transform_0(%arg0: i32, %arg1: i32) -> (i32, i32, i32, i32, i32) {
    %c0_i32 = arith.constant 0 : i32
    %c0_i32_0 = arith.constant 0 : i32
    %c0_i32_1 = arith.constant 0 : i32
    %c0_i32_2 = arith.constant 0 : i32
    return %arg0, %arg1, %c0_i32, %c0_i32_0, %c0_i32_1 : i32, i32, i32, i32, i32
  }
  func.func @transform_1(%arg0: i32, %arg1: i32) -> (i32, i32, i32, i32, i32) {
    %c1_i32 = arith.constant 1 : i32
    %c0_i32 = arith.constant 0 : i32
    %c0_i32_0 = arith.constant 0 : i32
    %c0_i32_1 = arith.constant 0 : i32
    return %arg0, %arg1, %c1_i32, %c0_i32, %c0_i32_0 : i32, i32, i32, i32, i32
  }
  func.func @transform_2(%arg0: i32, %arg1: i32) -> (i32, i32, i32, i32, i32) {
    %c1_i32 = arith.constant 1 : i32
    %0 = arith.addi %arg1, %c1_i32 : i32
    %c0_i32 = arith.constant 0 : i32
    %c0_i32_0 = arith.constant 0 : i32
    %c0_i32_1 = arith.constant 0 : i32
    %c0_i32_2 = arith.constant 0 : i32
    return %arg0, %0, %c0_i32, %c0_i32_0, %c0_i32_1 : i32, i32, i32, i32, i32
  }
  func.func @transform_3(%arg0: i32, %arg1: i32) -> (i32, i32, i32) {
    %c0_i32 = arith.constant 0 : i32
    %c0_i32_0 = arith.constant 0 : i32
    %c0_i32_1 = arith.constant 0 : i32
    %c0_i32_2 = arith.constant 0 : i32
    return %c0_i32, %c0_i32_0, %c0_i32_1 : i32, i32, i32
  }
  func.func @transform_4(%arg0: i32, %arg1: i32) -> (i32, i32) {
    %c0_i32 = arith.constant 0 : i32
    %c0_i32_0 = arith.constant 0 : i32
    %c0_i32_1 = arith.constant 0 : i32
    return %c0_i32, %c0_i32_0 : i32, i32
  }
  func.func @transform_5(%arg0: i32, %arg1: i32) -> (i32, i32) {
    %c1_i32 = arith.constant 1 : i32
    %0 = arith.muli %arg0, %c1_i32 : i32
    %1 = arith.addi %0, %arg1 : i32
    %c0_i32 = arith.constant 0 : i32
    %c0_i32_0 = arith.constant 0 : i32
    return %1, %c0_i32 : i32, i32
  }
}

</mosaic_0001>

<bundles_post_ra>
// kernel: downsample.1
= control target key start
LH: loop header
LB: loop body
LE: loop exit
PB: predicated region body
PF: predicated region fallthrough
CT: control target
= control target key end

     0   :  { %s2178_s18 = smov 0   ;;  %s2180_s19 = smov 0   ;;  %s2614_s0 = inlined_call_operand.vmem [shape: bf16[2,16,2,9,8], index: 0, kind: input, shape index: {}, may-alias: {0,1,2}]   ;;  %s2615_s1 = inlined_call_operand.vmem [shape: bf16[2,16,2,9,8], index: 1, kind: input, shape index: {}, may-alias: {0,1,2}]   ;;  %s2616_s2 = inlined_call_operand.vmem [shape: bf16[2,16,2,9,8], index: 2, kind: input, shape index: {}, may-alias: {0,1,2}]   ;;  %s2617_s3 = inlined_call_operand.vmem [shape: bf16[6,8,128], index: 3, kind: input, shape index: {}]   ;;  %s2618_s4 = inlined_call_operand.vmem [shape: f32[1,128], index: 4, kind: input, shape index: {}]   ;;  %s2619_s5 = inlined_call_operand.vmem [shape: f32[128,128], index: 5, kind: output, shape index: {}]  }
   0x1   :  { %s2182_s20 = smov 0   ;;  %s2184_s21 = smov 0  }
   0x2   :  { %s2186_s22 = smov 0  }
   0x3 LB: > { %s27_s23 = sadd.s32 1, %s2142_s21  ;;  %p43_p1 = scmp.ne.s32.totalorder %s2134_s19, %s2130_s18  ;;  %s2146_s22 = sphi %s2186_s22, %s15_s22   ;;  %s2142_s21 = sphi %s2184_s21, %s2628_s21   ;;  %s2138_s20 = sphi %s2182_s20, %s2627_s20   ;;  %s2134_s19 = sphi %s2180_s19, %s2626_s19   ;;  %s2130_s18 = sphi %s2178_s18, %s2625_s18  }
   0x4   : > { %p29_p0 = scmp.ge.s32.totalorder %s27_s23, 2  ;;  %p44_p2 = scmp.eq.s32.totalorder %s2146_s22, 0 }
   0x5   : > { %s36_s26 = sadd.s32 1, %s2134_s19  ;;  %p1806_p5 = scmp.ge.s32.totalorder %s2146_s22, 2 }
   0x6   : > { %s2630_s23 = smov (%p29_p0, %s27_s23), 0  ;;  %p2209_p3 = por %p44_p2, %p43_p1 }
   0x7   : > { %s31_s25 = ssub.s32 %s2142_s21, %s2630_s23  ;;  %203 = sbr.rel (%p1806_p5) target bundleno = 38 (0x26), region = 24 }
   0x8   : > { %p34_p4 = scmp.eq.s32.totalorder %s31_s25, 0 }
   0xa   : > { %s2217_s27 = scalar_select %p34_p4, %s2134_s19, %s36_s26  }
   0xe   : > { %206 = sbr.rel (!%p2209_p3) target bundleno = 22 (0x16), region = 28  ;;  %s208_s28 = sand.u32 (%p2209_p3), 1, %s2134_s19  }
   0xf   : > { %s1924_s29 = sshll.u32 (%p2209_p3), %s2142_s21, 8  ;;  %s1807_s30 = sshll.u32 (%p2209_p3), %s208_s28, 6 }
  0x10   : > { %s216_s8 = scalar_lea.vmem (%p2209_p3), %s2614_s0, %s1924_s29  ;;  %s210_s9 = scalar_lea.vmem (%p2209_p3), [#allocation3], %s1807_s30 }
  0x11   : > { %v232_v0 = vld [vmem:[%s216_s8] sm:$0xff] (%p2209_p3)   ;;  %v236_v1 = vld [vmem:[%s216_s8 + $0x10] sm:$0xff] (%p2209_p3)  }
  0x12   : > { %v240_v2 = vld [vmem:[%s216_s8 + $0x20] sm:$0xff] (%p2209_p3)   ;;  %233 = vst [vmem:[%s210_s9] sm:$0xff] (%p2209_p3), %v232_v0   ;;  %237 = vst [vmem:[%s210_s9 + $0x8] sm:$0xff] (%p2209_p3), %v236_v1   ;;  %v244_v3 = vld [vmem:[%s216_s8 + $0x30] sm:$0xff] (%p2209_p3)  }
  0x13   : > { %241 = vst [vmem:[%s210_s9 + $0x10] sm:$0xff] (%p2209_p3), %v240_v2   ;;  %v248_v4 = vld [vmem:[%s216_s8 + $0x40] sm:$0xff] (%p2209_p3)   ;;  %v252_v5 = vld [vmem:[%s216_s8 + $0x50] sm:$0xff] (%p2209_p3)   ;;  %245 = vst [vmem:[%s210_s9 + $0x18] sm:$0xff] (%p2209_p3), %v244_v3  }
  0x14   : > { %249 = vst [vmem:[%s210_s9 + $0x20] sm:$0xff] (%p2209_p3), %v248_v4   ;;  %253 = vst [vmem:[%s210_s9 + $0x28] sm:$0xff] (%p2209_p3), %v252_v5   ;;  %v256_v6 = vld [vmem:[%s216_s8 + $0x60] sm:$0xff] (%p2209_p3)   ;;  %v260_v7 = vld [vmem:[%s216_s8 + $0x70] sm:$0xff] (%p2209_p3)  }
  0x15   : > { %257 = vst [vmem:[%s210_s9 + $0x30] sm:$0xff] %v256_v6   ;;  %261 = vst [vmem:[%s210_s9 + $0x38] sm:$0xff] %v260_v7  }
  0x16 PF: > { %318 = sbr.rel (!%p2209_p3) target bundleno = 30 (0x1e), region = 69  ;;  %s320_s10 = sand.u32 (%p2209_p3), 1, %s2134_s19  }
  0x17   : > { %s1925_s11 = sshll.u32 (%p2209_p3), %s2142_s21, 8  ;;  %s1810_s12 = sshll.u32 (%p2209_p3), %s320_s10, 6 }
  0x18   : > { %s1720_s15 = scalar_lea.vmem (%p2209_p3), %s2615_s1, %s1925_s11  ;;  %s322_s16 = scalar_lea.vmem (%p2209_p3), [#allocation4], %s1810_s12 }
  0x19   : > { %v1813_v8 = vld [vmem:[%s1720_s15 + $0x8] sm:$0xff] (%p2209_p3)   ;;  %v1815_v9 = vld [vmem:[%s1720_s15 + $0x18] sm:$0xff] (%p2209_p3)  }
  0x1a   : > { %v1817_v10 = vld [vmem:[%s1720_s15 + $0x28] sm:$0xff] (%p2209_p3)   ;;  %346 = vst [vmem:[%s322_s16] sm:$0xff] (%p2209_p3), %v1813_v8   ;;  %350 = vst [vmem:[%s322_s16 + $0x8] sm:$0xff] (%p2209_p3), %v1815_v9   ;;  %v1819_v11 = vld [vmem:[%s1720_s15 + $0x38] sm:$0xff] (%p2209_p3)  }
  0x1b   : > { %354 = vst [vmem:[%s322_s16 + $0x10] sm:$0xff] (%p2209_p3), %v1817_v10   ;;  %v1821_v12 = vld [vmem:[%s1720_s15 + $0x48] sm:$0xff] (%p2209_p3)   ;;  %v1823_v13 = vld [vmem:[%s1720_s15 + $0x58] sm:$0xff] (%p2209_p3)   ;;  %358 = vst [vmem:[%s322_s16 + $0x18] sm:$0xff] (%p2209_p3), %v1819_v11  }
  0x1c   : > { %362 = vst [vmem:[%s322_s16 + $0x20] sm:$0xff] (%p2209_p3), %v1821_v12   ;;  %366 = vst [vmem:[%s322_s16 + $0x28] sm:$0xff] (%p2209_p3), %v1823_v13   ;;  %v1825_v14 = vld [vmem:[%s1720_s15 + $0x68] sm:$0xff] (%p2209_p3)   ;;  %v1827_v15 = vld [vmem:[%s1720_s15 + $0x78] sm:$0xff] (%p2209_p3)  }
  0x1d   : > { %370 = vst [vmem:[%s322_s16 + $0x30] sm:$0xff] %v1825_v14   ;;  %374 = vst [vmem:[%s322_s16 + $0x38] sm:$0xff] %v1827_v15  }
  0x1e PF: > { %431 = sbr.rel (!%p2209_p3) target bundleno = 38 (0x26), region = 110  ;;  %s433_s17 = sand.u32 (%p2209_p3), 1, %s2134_s19  }
  0x1f   : > { %s1926_s25 = sshll.u32 (%p2209_p3), %s2142_s21, 8  ;;  %s1829_s26 = sshll.u32 (%p2209_p3), %s433_s17, 6 }
  0x20   : > { %s1728_s30 = scalar_lea.vmem (%p2209_p3), %s2616_s2, %s1926_s25  ;;  %s435_s6 = scalar_lea.vmem (%p2209_p3), [#allocation5], %s1829_s26 }
  0x21   : > { %v1832_v16 = vld [vmem:[%s1728_s30 + $0x80] sm:$0xff] (%p2209_p3)   ;;  %v1834_v17 = vld [vmem:[%s1728_s30 + $0x90] sm:$0xff] (%p2209_p3)  }
  0x22   : > { %v1836_v18 = vld [vmem:[%s1728_s30 + $0xa0] sm:$0xff] (%p2209_p3)   ;;  %459 = vst [vmem:[%s435_s6] sm:$0xff] (%p2209_p3), %v1832_v16   ;;  %463 = vst [vmem:[%s435_s6 + $0x8] sm:$0xff] (%p2209_p3), %v1834_v17   ;;  %v1838_v19 = vld [vmem:[%s1728_s30 + $0xb0] sm:$0xff] (%p2209_p3)  }
  0x23   : > { %467 = vst [vmem:[%s435_s6 + $0x10] sm:$0xff] (%p2209_p3), %v1836_v18   ;;  %v1840_v20 = vld [vmem:[%s1728_s30 + $0xc0] sm:$0xff] (%p2209_p3)   ;;  %v1842_v21 = vld [vmem:[%s1728_s30 + $0xd0] sm:$0xff] (%p2209_p3)   ;;  %471 = vst [vmem:[%s435_s6 + $0x18] sm:$0xff] (%p2209_p3), %v1838_v19  }
  0x24   : > { %475 = vst [vmem:[%s435_s6 + $0x20] sm:$0xff] (%p2209_p3), %v1840_v20   ;;  %479 = vst [vmem:[%s435_s6 + $0x28] sm:$0xff] (%p2209_p3), %v1842_v21   ;;  %v1844_v22 = vld [vmem:[%s1728_s30 + $0xe0] sm:$0xff] (%p2209_p3)   ;;  %v1846_v23 = vld [vmem:[%s1728_s30 + $0xf0] sm:$0xff] (%p2209_p3)  }
  0x25   : > { %483 = vst [vmem:[%s435_s6 + $0x30] sm:$0xff] %v1844_v22   ;;  %487 = vst [vmem:[%s435_s6 + $0x38] sm:$0xff] %v1846_v23  }
  0x26 PF: > { %p1848_p6 = scmp.ge.s32.totalorder %s2146_s22, 1  ;;  %p543_p7 = scmp.lt.s32.totalorder %s2146_s22, 3 }
  0x28   : > { %p544_p8 = pnand %p1848_p6, %p543_p7 }
  0x29   : > { %vm858_vm0 = vcmask (!%p544_p8), 1043456   ;;  %v1885_v24 = vld [vmem:[%s2617_s3 + $0x8] sm:$0xf] (!%p544_p8)  ;;  %s550_s8 = sand.u32 (!%p544_p8), 1, %s2130_s18   ;;  %v1868_v26 = vld [vmem:[%s2617_s3 + $0x4] sm:$0xf] (!%p544_p8) }
  0x2a   : > { %547 = sbr.rel (%p544_p8) target bundleno = 346 (0x15a), region = 151  ;;  %2060 = vmatprep.subr.msk.bf16.mxu0 (!%p544_p8), %vm858_vm0, %v1885_v24  ;;  %v1268_v25 = vsel (!%p544_p8), %vm858_vm0, %v1885_v24, 0  ;;  %s2249_s9 = sshll.u32 (!%p544_p8), %s550_s8, 6  ;;  %vm845_vm1 = vcmask (!%p544_p8), 64512   ;;  %2057 = vmatprep.subr.msk.bf16.mxu1 (!%p544_p8), %vm858_vm0, %v1868_v26  ;;  %v860_v27 = vsel (!%p544_p8), %vm858_vm0, %v1868_v26, 0  ;;  %vm628_vm4 = vcmask (!%p544_p8), 60416  }
  0x2b   : > { %1988 = vmatpush3.bf16.msra.mxu0 (!%p544_p8), %v1268_v25  ;;  %s2257_s12 = scalar_lea.vmem (!%p544_p8), [#allocation4], %s2249_s9  ;;  %1958 = vmatpush3.bf16.msra.mxu1 (!%p544_p8), %v860_v27  ;;  %vm715_vm2 = vsmask.f32 (!%p544_p8), 3328  ;;  %vm716_vm3 = vsmask.f32 (!%p544_p8), 7440  ;;  %s2264_s18 = scalar_lea.vmem (!%p544_p8), [#allocation3], %s2249_s9 }
  0x2c   : > { %v683_v28 = vld [vmem:[%s2257_s12] sm:$0xf] (!%p544_p8)  ;;  %v685_v29 = vld [vmem:[%s2257_s12 + $0x8] sm:$0xf] (!%p544_p8)  ;;  %v687_v30 = vld [vmem:[%s2257_s12 + $0x10] sm:$0xf] (!%p544_p8) }
  0x2d   : > { %v1028_v31 = vshrl.u32 (!%p544_p8), %v683_v28, 16  ;;  %v1031_v32 = vshll.u32 (!%p544_p8), %v683_v28, 16  ;;  %v1042_v33 = vshrl.u32 (!%p544_p8), %v685_v29, 16  ;;  %v1045_v34 = vshll.u32 (!%p544_p8), %v685_v29, 16  ;;  %v689_v35 = vld [vmem:[%s2257_s12 + $0x18] sm:$0xf] (!%p544_p8)  ;;  %vm2310_vm5 = vmor (!%p544_p8), %vm715_vm2, %vm716_vm3 }
  0x2e   : > { %v1895_v36 = vcombine.low (!%p544_p8), %v683_v28, %v685_v29  ;;  %v1056_v37 = vshrl.u32 (!%p544_p8), %v687_v30, 16  ;;  %v1059_v38 = vshll.u32 (!%p544_p8), %v687_v30, 16  ;;  %v1070_v39 = vshrl.u32 (!%p544_p8), %v689_v35, 16  ;;  %v2267_v40 = vld [vmem:[%s2264_s18] sm:$0xf] (!%p544_p8)  ;;  %s566_s29 = scalar_lea.vmem (!%p544_p8), [#allocation5], %s2249_s9 }
  0x2f   : > { %v1030_v41 = vrot.slane (!%p544_p8), %v1028_v31, 4  ;;  %v1033_v42 = vrot.slane (!%p544_p8), %v1031_v32, 5  ;;  %v1044_v43 = vrot.slane (!%p544_p8), %v1042_v33, 4  ;;  %v1047_v44 = vrot.slane (!%p544_p8), %v1045_v34, 5  ;;  %v668_v45 = vld [vmem:[%s2264_s18 + $0x4] sm:$0x1] (!%p544_p8) }
  0x30   : > { %1989 = vmatprep.mubr.msk.bf16.mxu0 (!%p544_p8), %vm845_vm1, %v1895_v36  ;;  %v1058_v46 = vrot.slane (!%p544_p8), %v1056_v37, 4  ;;  %v1061_v47 = vrot.slane (!%p544_p8), %v1059_v38, 5  ;;  %v1072_v48 = vrot.slane (!%p544_p8), %v1070_v39, 4  ;;  %v1073_v49 = vshll.u32 (!%p544_p8), %v689_v35, 16  ;;  %v2272_v50 = vld [vmem:[%s2264_s18 + $0x8] sm:$0xf] (!%p544_p8) }
  0x31   : > { %v1034_v51 = vor.u32 %v1033_v42, %v1030_v41  ;;  %v1048_v52 = vor.u32 %v1047_v44, %v1044_v43  ;;  %v1896_v53 = vcombine.low %v687_v30, %v689_v35  ;;  %v719_v54 = vshrl.u32 %v2267_v40, 16  ;;  %v2278_v55 = vld [vmem:[%s2617_s3] sm:$0xf]  ;;  %v670_v58 = vld [vmem:[%s2264_s18 + $0xc] sm:$0x1]  ;;  %s1852_s30 = sshll.u32 %s2138_s20, 3 }
  0x32   : > { %v1062_v56 = vor.u32 %v1061_v47, %v1058_v46  ;;  %v1075_v57 = vrot.slane %v1073_v49, 5  ;;  %v722_v59 = vshll.u32 %v2267_v40, 16  ;;  %v728_v60 = vshll.u32 %v668_v45, 16  ;;  %2058 = vmatprep.subr.msk.bf16.mxu1 %vm858_vm0, %v2278_v55  ;;  %v691_v1 = vld [vmem:[%s2257_s12 + $0x20] sm:$0xf]  ;;  %p606_p9 = scmp.lt.s32.totalorder %s1852_s30, 15 }
  0x33   : > { %v2284_v61 = vrot.slane %v1034_v51, 4  ;;  %v2286_v62 = vrot.slane %v1048_v52, 4  ;;  %1990 = vmatmul.mubr.msk.bf16.vlgmr.msra.gmra.mrb[0].mxu0 %vm845_vm1, %v1896_v53  ;;  %v721_v63 = vrot.slane %v719_v54, 4  ;;  %v733_v0 = vshrl.u32 %v2272_v50, 16  ;;  %v2296_v6 = vld [vmem:[%s2617_s3 + $0x14] sm:$0xf] }
  0x34   : > { %v2291_v2 = vrot.slane %v1062_v56, 4  ;;  %v1076_v3 = vor.u32 %v1075_v57, %v1072_v48  ;;  %v724_v4 = vrot.slane %v722_v59, 5  ;;  %v730_v5 = vrot.slane %v728_v60, 5  ;;  %v693_v10 = vld [vmem:[%s2257_s12 + $0x28] sm:$0xf]  ;;  %2061 = vmatprep.subr.msk.bf16.mxu0 %vm858_vm0, %v2296_v6  ;;  %s2632_s30 = smov (!%p606_p9, %s1852_s30), 15 }
  0x35   : > { %v735_v7 = vrot.slane %v733_v0, 4  ;;  %v736_v8 = vshll.u32 %v2272_v50, 16  ;;  %v742_v9 = vshll.u32 %v670_v58, 16  ;;  %v1084_v11 = vshrl.u32 %v691_v1, 16  ;;  %v2303_v15 = vld [vmem:[%s2264_s18 + $0x10] sm:$0xf] }
  0x36   : > { %v725_v12 = vor.u32 %v724_v4, %v721_v63  ;;  %v1087_v13 = vshll.u32 %v691_v1, 16  ;;  %v1098_v14 = vshrl.u32 %v693_v10, 16  ;;  %v672_v16 = vld [vmem:[%s2264_s18 + $0x14] sm:$0x1]  ;;  %v2306_v17 = vrot.slane %v1076_v3, 4  ;;  %s1853_s6 = sshll.u32 %s2632_s30, 3 }
  0x37   : > { %v738_v19 = vrot.slane %v736_v8, 5  ;;  %v744_v20 = vrot.slane %v742_v9, 5  ;;  %v2314_v21 = vrot.slane %v1084_v11, 4  ;;  %v2317_v22 = vld [vmem:[%s2264_s18 + $0x18] sm:$0xf]  ;;  %v1101_v25 = vshll.u32 %v693_v10, 16  ;;  %s2589_s10 = scalar_lea.vmem %s2619_s5, %s1853_s6 }
  0x38   : > { %v726_v23 = vrot.slane %v725_v12, 4  ;;  %v2319_v24 = vrot.slane %v1087_v13, 5  ;;  %v1897_v26 = vcombine.low %v691_v1, %v693_v10  ;;  %v674_v27 = vld [vmem:[%s2264_s18 + $0x1c] sm:$0x1]  ;;  %v2322_v29 = vrot.slane %v1098_v14, 4 }
  0x39   : > { %v739_v28 = vor.u32 %v738_v19, %v735_v7  ;;  %v747_v30 = vshrl.u32 %v2303_v15, 16  ;;  %v750_v31 = vshll.u32 %v2303_v15, 16  ;;  %v756_v33 = vshll.u32 %v672_v16, 16  ;;  %v695_v41 = vld [vmem:[%s2257_s12 + $0x30] sm:$0xf] }
  0x3a   : > { %v731_v32 = vsel %vm2310_vm5, %v726_v23, %v730_v5  ;;  %1993 = vmatprep.mubr.msk.bf16.mxu0 %vm845_vm1, %v1897_v26  ;;  %v761_v34 = vshrl.u32 %v2317_v22, 16  ;;  %v764_v35 = vshll.u32 %v2317_v22, 16  ;;  %vm630_vm6 = vcmask 57344   ;;  %v2335_v46 = vld [vmem:[%s2257_s12 + $0x38] sm:$0xf] }
  0x3b   : > { %v740_v36 = vrot.slane %v739_v28, 4  ;;  %v749_v37 = vrot.slane %v747_v30, 4  ;;  %v752_v38 = vrot.slane %v750_v31, 5  ;;  %v770_v39 = vshll.u32 %v674_v27, 16  ;;  %v2342_v52 = vld [vmem:[%s2264_s18 + $0x20] sm:$0xf] }
  0x3c   : > { %v2332_v42 = vrot.slane %v1101_v25, 5  ;;  %v758_v43 = vrot.slane %v756_v33, 5  ;;  %v763_v44 = vrot.slane %v761_v34, 4  ;;  %v766_v45 = vrot.slane %v764_v35, 5  ;;  %v676_v53 = vld [vmem:[%s2264_s18 + $0x24] sm:$0x1] }
  0x3d   : > { %v745_v47 = vsel %vm2310_vm5, %v740_v36, %v744_v20  ;;  %v753_v48 = vor.u32 %v752_v38, %v749_v37  ;;  %v960_v49 = vsel %vm858_vm0, %v2278_v55, 0  ;;  %v1112_v51 = vshrl.u32 %v695_v41, 16  ;;  %v2346_v59 = vld [vmem:[%s2264_s18 + $0x28] sm:$0xf]  ;;  %v1856_v3 = vld [vmem:[%s2264_s18 + $0x10] sm:$0xf] }
  0x3e   : > { %v1869_v54 = vcombine.low %v731_v32, %v745_v47  ;;  %v767_v56 = vor.u32 %v766_v45, %v763_v44  ;;  %v772_v57 = vrot.slane %v770_v39, 5  ;;  %v1115_v58 = vshll.u32 %v695_v41, 16  ;;  %v1854_v60 = vld [vmem:[%s2264_s18 + $0x8] sm:$0xf]  ;;  %v678_v9 = vld [vmem:[%s2264_s18 + $0x2c] sm:$0x1] }
  0x3f   : > { %v754_v63 = vrot.slane %v753_v48, 4  ;;  %v2349_v0 = vrot.slane %v1112_v51, 4  ;;  %v1126_v1 = vshrl.u32 %v2335_v46, 16  ;;  %v1898_v55 = vcombine.low %v695_v41, %v2335_v46  ;;  %629 = vst.msk [vmem:[#allocation2] sm:$0xf] %vm628_vm4, %v1854_v60 }
  0x40   : > { %1959 = vmatprep.mubr.msk.bf16.mxu1 %vm845_vm1, %v1869_v54  ;;  %v768_v4 = vrot.slane %v767_v56, 4  ;;  %v2356_v5 = vrot.slane %v1115_v58, 5  ;;  %v1129_v7 = vshll.u32 %v2335_v46, 16  ;;  %v1484_v8 = vsel %vm858_vm0, %v2296_v6, 0  ;;  %636 = vst.msk [vmem:[#allocation2 + $0x8] sm:$0xf] %vm628_vm4, %v1856_v3 }
  0x41   : > { %v759_v10 = vsel %vm2310_vm5, %v754_v63, %v758_v43  ;;  %1994 = vmatmul.mubr.msk.bf16.gmra.mrb[4].mxu0 %vm845_vm1, %v1898_v55  ;;  %v775_v11 = vshrl.u32 %v2342_v52, 16  ;;  %v778_v12 = vshll.u32 %v2342_v52, 16  ;;  %v1855_v13 = vld [vmem:[%s2264_s18 + $0xc] sm:$0x1]  ;;  %v1857_v14 = vld [vmem:[%s2264_s18 + $0x14] sm:$0x1] }
  0x42   : > { %v633_v16 = vld [vmem:[#allocation2 + $0x4] sm:$0x1]  ;;  %v773_v19 = vsel %vm2310_vm5, %v768_v4, %v772_v57  ;;  %1998 = vmatpush3.bf16.msra.mxu0 %v1484_v8  ;;  %v784_v6 = vshll.u32 %v676_v53, 16  ;;  %v789_v20 = vshrl.u32 %v2346_v59, 16  ;;  %v792_v23 = vshll.u32 %v2346_v59, 16 }
  0x43   : > { %v637_v25 = vld [vmem:[#allocation2 + $0xc] sm:$0x1]  ;;  %v1870_v26 = vcombine.low %v759_v10, %v773_v19  ;;  %v777_v27 = vrot.slane %v775_v11, 4  ;;  %v780_v28 = vrot.slane %v778_v12, 5  ;;  %v798_v30 = vshll.u32 %v678_v9, 16 }
  0x44   : > { %v2375_v31 = vld [vmem:[%s2264_s18 + $0x30] sm:$0xf]  ;;  %v2377_v32 = vrot.slane %v1126_v1, 4  ;;  %v791_v33 = vrot.slane %v789_v20, 4  ;;  %v794_v34 = vrot.slane %v792_v23, 5  ;;  %v786_v36 = vrot.slane %v784_v6, 5 }
  0x45   : > { %vm631_vm7 = vsmask.f32 256  ;;  %1960 = vmatmul.mubr.msk.bf16.vlgmr.msra.gmra.mrb[0].mxu1 %vm845_vm1, %v1870_v26  ;;  %v781_v35 = vor.u32 %v780_v28, %v777_v27  ;;  %v800_v37 = vrot.slane %v798_v30, 5  ;;  %v680_v39 = vld [vmem:[%s2264_s18 + $0x34] sm:$0x1]  ;;  %v803_v41 = vshrl.u32 %v2375_v31, 16 }
  0x46   : > { %vm2381_vm8 = vmand %vm630_vm6, %vm631_vm7  ;;  %1968 = vmatpush3.bf16.msra.mxu1 %v960_v49  ;;  %v795_v43 = vor.u32 %v794_v34, %v791_v33  ;;  %v2391_v47 = vld [vmem:[#allocation2] sm:$0xf]  ;;  %v2394_v48 = vld [vmem:[%s2264_s18 + $0x38] sm:$0xf]  ;;  %v806_v51 = vshll.u32 %v2375_v31, 16  ;;  %v812_v10 = vshll.u32 %v680_v39, 16 }
  0x47   : > { %v634_v44 = vsel %vm2381_vm8, %v1855_v13, %v633_v16  ;;  %v638_v45 = vsel %vm2381_vm8, %v1857_v14, %v637_v25  ;;  %v782_v53 = vrot.slane %v781_v35, 4  ;;  %v2397_v54 = vld [vmem:[#allocation2 + $0x8] sm:$0xf]  ;;  %v1344_v49 = vshrl.u32 %v2391_v47, 16  ;;  %v682_v57 = vld [vmem:[%s2264_s18 + $0x3c] sm:$0x1] }
  0x48   : > { %635 = vst [vmem:[#allocation2 + $0x4] sm:$0x1] %v634_v44  ;;  %639 = vst [vmem:[#allocation2 + $0xc] sm:$0x1] %v638_v45  ;;  %v1347_v56 = vshll.u32 %v2391_v47, 16  ;;  %v805_v58 = vrot.slane %v803_v41, 4 }
  0x49   : > { %v796_v60 = vrot.slane %v795_v43, 4  ;;  %v1358_v63 = vshrl.u32 %v2397_v54, 16  ;;  %v1361_v1 = vshll.u32 %v2397_v54, 16  ;;  %v808_v55 = vrot.slane %v806_v51, 5  ;;  %v1858_v3 = vld [vmem:[%s2264_s18 + $0x18] sm:$0xf] }
  0x4a   : > { %v787_v4 = vsel %vm2310_vm5, %v782_v53, %v786_v36  ;;  %v1346_v8 = vrot.slane %v1344_v49, 4  ;;  %v1349_v9 = vrot.slane %v1347_v56, 5  ;;  %v1859_v11 = vld [vmem:[%s2264_s18 + $0x1c] sm:$0x1]  ;;  %640 = vst.msk [vmem:[#allocation2 + $0x10] sm:$0xf] %vm628_vm4, %v1858_v3 }
  0x4b   : > { %v801_v12 = vsel %vm2310_vm5, %v796_v60, %v800_v37  ;;  %v1360_v13 = vrot.slane %v1358_v63, 4  ;;  %v1363_v14 = vrot.slane %v1361_v1, 5  ;;  %v809_v16 = vor.u32 %v808_v55, %v805_v58  ;;  %v1860_v19 = vld [vmem:[%s2264_s18 + $0x20] sm:$0xf]  ;;  %v1861_v6 = vld [vmem:[%s2264_s18 + $0x24] sm:$0x1] }
  0x4c   : > { %v1871_v20 = vcombine.low %v787_v4, %v801_v12  ;;  %v1350_v23 = vor.u32 %v1349_v9, %v1346_v8  ;;  %v2413_v25 = vrot.slane %v812_v10, 5  ;;  %v817_v26 = vshrl.u32 %v2394_v48, 16  ;;  %v641_v27 = vld [vmem:[#allocation2 + $0x14] sm:$0x1]  ;;  %644 = vst.msk [vmem:[#allocation2 + $0x18] sm:$0xf] %vm628_vm4, %v1860_v19 }
  0x4d   : > { %v645_v28 = vld [vmem:[#allocation2 + $0x1c] sm:$0x1]  ;;  %v1364_v30 = vor.u32 %v1363_v14, %v1360_v13  ;;  %v810_v33 = vrot.slane %v809_v16, 4  ;;  %v820_v34 = vshll.u32 %v2394_v48, 16  ;;  %v826_v35 = vshll.u32 %v682_v57, 16 }
  0x4e   : > { %v1886_v36 = vld [vmem:[%s2617_s3 + $0xc] sm:$0xf]  ;;  %1963 = vmatprep.mubr.msk.bf16.mxu1 %vm845_vm1, %v1871_v20  ;;  %v1351_v37 = vrot.slane %v1350_v23, 4  ;;  %v819_v39 = vrot.slane %v817_v26, 4  ;;  %v642_v41 = vsel %vm2381_vm8, %v1859_v11, %v641_v27  ;;  %v646_v43 = vsel %vm2381_vm8, %v1861_v6, %v645_v28  ;;  %v1862_v44 = vld [vmem:[%s2264_s18 + $0x28] sm:$0xf] }
  0x4f   : > { %2059 = vmatprep.subr.msk.bf16.mxu1 %vm858_vm0, %v1886_v36  ;;  %v1863_v45 = vld [vmem:[%s2264_s18 + $0x2c] sm:$0x1]  ;;  %v700_v51 = vld [vmem:[#allocation2 + $0x4] sm:$0x1]  ;;  %v1365_v49 = vrot.slane %v1364_v30, 4  ;;  %v822_v56 = vrot.slane %v820_v34, 5  ;;  %v815_v55 = vsel %vm2310_vm5, %v810_v33, %v2413_v25  ;;  %v1877_v8 = vcombine.low %v2267_v40, %v2272_v50 }
  0x50   : > { %v702_v53 = vld [vmem:[#allocation2 + $0xc] sm:$0x1]  ;;  %643 = vst [vmem:[#allocation2 + $0x14] sm:$0x1] %v642_v41  ;;  %647 = vst [vmem:[#allocation2 + $0x1c] sm:$0x1] %v646_v43  ;;  %v1878_v11 = vcombine.low %v2303_v15, %v2317_v22  ;;  %v1879_v25 = vcombine.low %v2342_v52, %v2346_v59  ;;  %v1913_v59 = vcombine.low %v2391_v47, %v2397_v54 }
  0x51   : > { %648 = vst.msk [vmem:[#allocation2 + $0x20] sm:$0xf] %vm628_vm4, %v1862_v44  ;;  %v1353_v57 = vshll.u32 %v700_v51, 16  ;;  %v1367_v58 = vshll.u32 %v702_v53, 16  ;;  %v828_v60 = vrot.slane %v826_v35, 5  ;;  %v2432_v1 = vsel %vm858_vm0, %v1886_v36, 0 }
  0x52   : > { %v1864_v63 = vld [vmem:[%s2264_s18 + $0x30] sm:$0xf]  ;;  %v823_v3 = vor.u32 %v822_v56, %v819_v39  ;;  %v1865_v9 = vld [vmem:[%s2264_s18 + $0x34] sm:$0x1]  ;;  %v649_v10 = vld [vmem:[#allocation2 + $0x24] sm:$0x1] }
  0x53   : > { %v2437_v4 = vld [vmem:[#allocation2 + $0x10] sm:$0xf]  ;;  %652 = vst.msk [vmem:[#allocation2 + $0x28] sm:$0xf] %vm628_vm4, %v1864_v63  ;;  %v1355_v12 = vrot.slane %v1353_v57, 5  ;;  %v1369_v13 = vrot.slane %v1367_v58, 5  ;;  %v650_v40 = vsel %vm2381_vm8, %v1863_v45, %v649_v10  ;;  %v1880_v57 = vcombine.low %v2375_v31, %v2394_v48 }
  0x54   : > { %v1372_v14 = vshrl.u32 %v2437_v4, 16  ;;  %v1375_v16 = vshll.u32 %v2437_v4, 16  ;;  %v653_v19 = vld [vmem:[#allocation2 + $0x2c] sm:$0x1]  ;;  %v824_v6 = vrot.slane %v823_v3, 4 }
  0x55   : > { %v2447_v20 = vld [vmem:[#allocation2 + $0x18] sm:$0xf]  ;;  %v654_v50 = vsel %vm2381_vm8, %v1865_v9, %v653_v19  ;;  %v1903_v23 = vld [vmem:[%s2617_s3 + $0x10] sm:$0xf]  ;;  %v1356_v26 = vsel %vm2310_vm5, %v1351_v37, %v1355_v12  ;;  %v1370_v27 = vsel %vm2310_vm5, %v1365_v49, %v1369_v13  ;;  %651 = vst [vmem:[#allocation2 + $0x24] sm:$0x1] %v650_v40 }
  0x56   : > { %v1374_v28 = vrot.slane %v1372_v14, 4  ;;  %v1377_v30 = vrot.slane %v1375_v16, 5  ;;  %655 = vst [vmem:[#allocation2 + $0x2c] sm:$0x1] %v654_v50  ;;  %2062 = vmatprep.subr.msk.bf16.mxu0 %vm858_vm0, %v1903_v23  ;;  %v1866_v33 = vld [vmem:[%s2264_s18 + $0x38] sm:$0xf]  ;;  %v1905_v35 = vcombine.low %v1356_v26, %v1370_v27  ;;  %v829_v36 = vsel %vm2310_vm5, %v824_v6, %v828_v60 }
  0x57   : > { %v1867_v34 = vld [vmem:[%s2264_s18 + $0x3c] sm:$0x1]  ;;  %v1386_v39 = vshrl.u32 %v2447_v20, 16  ;;  %v1389_v41 = vshll.u32 %v2447_v20, 16  ;;  %656 = vst.msk [vmem:[#allocation2 + $0x30] sm:$0xf] %vm628_vm4, %v1866_v33  ;;  %v1872_v44 = vcombine.low %v815_v55, %v829_v36 }
  0x58   : > { %v657_v37 = vld [vmem:[#allocation2 + $0x34] sm:$0x1]  ;;  %v660_v43 = vld [vmem:[%s566_s29] sm:$0xf]  ;;  %v706_v51 = vld [vmem:[#allocation2 + $0x1c] sm:$0x1]  ;;  %v1378_v53 = vor.u32 %v1377_v30, %v1374_v28  ;;  %1999 = vmatprep.mubr.msk.bf16.mxu0 %vm845_vm1, %v1905_v35 }
  0x59   : > { %v704_v45 = vld [vmem:[#allocation2 + $0x14] sm:$0x1]  ;;  %v2471_v49 = vld [vmem:[#allocation2 + $0x20] sm:$0xf]  ;;  %v658_v56 = vsel %vm2381_vm8, %v1867_v34, %v657_v37  ;;  %663 = vst.msk [vmem:[#allocation2 + $0x38] sm:$0xf] %vm628_vm4, %v660_v43  ;;  %1964 = vmatmul.mubr.msk.bf16.gmra.mrb[4].mxu1 %vm845_vm1, %v1872_v44 }
  0x5a   : > { %v1381_v58 = vshll.u32 %v704_v45, 16  ;;  %v1388_v60 = vrot.slane %v1386_v39, 4  ;;  %v1391_v63 = vrot.slane %v1389_v41, 5  ;;  %v1395_v3 = vshll.u32 %v706_v51, 16  ;;  %659 = vst [vmem:[#allocation2 + $0x34] sm:$0x1] %v658_v56  ;;  %1969 = vmatprep.mubr.msk.bf16.mxu1 %vm845_vm1, %v1877_v8 }
  0x5b   : > { %v661_v55 = vld [vmem:[%s566_s29 + $0x4] sm:$0x1]  ;;  %v1379_v9 = vrot.slane %v1378_v53, 4  ;;  %v2480_v10 = vld [vmem:[#allocation2 + $0x28] sm:$0xf]  ;;  %v1400_v12 = vshrl.u32 %v2471_v49, 16  ;;  %v1090_v8 = vor.u32 %v2319_v24, %v2314_v21 }
  0x5c   : > { %v1403_v13 = vshll.u32 %v2471_v49, 16  ;;  %v1584_v14 = vsel %vm858_vm0, %v1903_v23, 0  ;;  %v1383_v16 = vrot.slane %v1381_v58, 5  ;;  %v1392_v19 = vor.u32 %v1391_v63, %v1388_v60  ;;  %v664_v50 = vld [vmem:[#allocation2 + $0x3c] sm:$0x1] }
  0x5d   : > { %v1397_v6 = vrot.slane %v1395_v3, 5  ;;  %v1414_v40 = vshrl.u32 %v2480_v10, 16  ;;  %v1402_v26 = vrot.slane %v1400_v12, 4  ;;  %v1417_v28 = vshll.u32 %v2480_v10, 16  ;;  %v708_v34 = vld [vmem:[#allocation2 + $0x24] sm:$0x1] }
  0x5e   : > { %v1405_v27 = vrot.slane %v1403_v13, 5  ;;  %v665_v30 = vsel %vm2381_vm8, %v661_v55, %v664_v50  ;;  %v1384_v33 = vsel %vm2310_vm5, %v1379_v9, %v1383_v16  ;;  %v1393_v23 = vrot.slane %v1392_v19, 4  ;;  %v710_v35 = vld [vmem:[#allocation2 + $0x2c] sm:$0x1]  ;;  %v2494_v44 = vld [vmem:[#allocation2 + $0x30] sm:$0xf] }
  0x5f   : > { %v1416_v36 = vrot.slane %v1414_v40, 4  ;;  %666 = vst [vmem:[#allocation2 + $0x3c] sm:$0x1] %v665_v30  ;;  %v1409_v41 = vshll.u32 %v708_v34, 16  ;;  %v1419_v37 = vrot.slane %v1417_v28, 5  ;;  %v1423_v43 = vshll.u32 %v710_v35, 16 }
  0x60   : > { %v1406_v39 = vor.u32 %v1405_v27, %v1402_v26  ;;  %v1398_v38 = vsel %vm2310_vm5, %v1393_v23, %v1397_v6  ;;  %v2498_v45 = vld [vmem:[#allocation2 + $0x38] sm:$0xf]  ;;  %v1428_v51 = vshrl.u32 %v2494_v44, 16  ;;  %v1431_v53 = vshll.u32 %v2494_v44, 16  ;;  %v684_v56 = vld [vmem:[%s2257_s12 + $0x4] sm:$0x1] }
  0x61   : > { %v1104_v58 = vor.u32 %v2332_v42, %v2322_v29  ;;  %v1906_v60 = vcombine.low %v1384_v33, %v1398_v38  ;;  %v1411_v3 = vrot.slane %v1409_v41, 5  ;;  %v1420_v55 = vor.u32 %v1419_v37, %v1416_v36  ;;  %v712_v9 = vld [vmem:[#allocation2 + $0x34] sm:$0x1]  ;;  %v686_v12 = vld [vmem:[%s2257_s12 + $0xc] sm:$0x1]  ;;  %1970 = vmatmul.mubr.msk.bf16.vlgmr.msra.gmra.mrb[0].mxu1 %vm845_vm1, %v1878_v11 }
  0x62   : > { %v1407_v63 = vrot.slane %v1406_v39, 4  ;;  %v1425_v13 = vrot.slane %v1423_v43, 5  ;;  %v1430_v16 = vrot.slane %v1428_v51, 4  ;;  %v1433_v19 = vrot.slane %v1431_v53, 5  ;;  %v688_v40 = vld [vmem:[%s2257_s12 + $0x14] sm:$0x1]  ;;  %1978 = vmatpush3.bf16.msra.mxu1 %v2432_v1  ;;  %1973 = vmatprep.mubr.msk.bf16.mxu1 %vm845_vm1, %v1879_v25 }
  0x63   : > { %v1437_v6 = vshll.u32 %v712_v9, 16  ;;  %2000 = vmatmul.mubr.msk.bf16.vlgmr.msra.gmra.mrb[0].mxu0 %vm845_vm1, %v1906_v60  ;;  %v1421_v26 = vrot.slane %v1420_v55, 4  ;;  %v1442_v29 = vshrl.u32 %v2498_v45, 16  ;;  %v1445_v42 = vshll.u32 %v2498_v45, 16  ;;  %v690_v23 = vld [vmem:[%s2257_s12 + $0x1c] sm:$0x1] }
  0x64   : > { %v1412_v50 = vsel %vm2310_vm5, %v1407_v63, %v1411_v3  ;;  %v1434_v27 = vor.u32 %v1433_v19, %v1430_v16  ;;  %2008 = vmatpush3.bf16.msra.mxu0 %v1584_v14  ;;  %v1037_v30 = vshll.u32 %v684_v56, 16  ;;  %v1051_v33 = vshll.u32 %v686_v12, 16  ;;  %v692_v51 = vld [vmem:[%s2257_s12 + $0x24] sm:$0x1]  ;;  %v694_v56 = vld [vmem:[%s2257_s12 + $0x2c] sm:$0x1] }
  0x65   : > { %v1439_v28 = vrot.slane %v1437_v6, 5  ;;  %v1426_v34 = vsel %vm2310_vm5, %v1421_v26, %v1425_v13  ;;  %v1444_v15 = vrot.slane %v1442_v29, 4  ;;  %v1447_v22 = vrot.slane %v1445_v42, 5  ;;  %v696_v3 = vld [vmem:[%s2257_s12 + $0x34] sm:$0x1] }
  0x66   : > { %v714_v35 = vld [vmem:[#allocation2 + $0x3c] sm:$0x1]  ;;  %v1065_v1 = vshll.u32 %v688_v40, 16  ;;  %v1907_v11 = vcombine.low %v1412_v50, %v1426_v34  ;;  %v1435_v36 = vrot.slane %v1434_v27, 4  ;;  %v1039_v39 = vrot.slane %v1037_v30, 5 }
  0x67   : > { %v1451_v14 = vshll.u32 %v714_v35, 16  ;;  %v1448_v41 = vor.u32 %v1447_v22, %v1444_v15  ;;  %v1053_v37 = vrot.slane %v1051_v33, 5  ;;  %v1079_v38 = vshll.u32 %v690_v23, 16  ;;  %v698_v9 = vld [vmem:[%s2257_s12 + $0x3c] sm:$0x1] }
  0x68   : > { %v1067_v43 = vrot.slane %v1065_v1, 5  ;;  %v1131_v53 = vrot.slane %v1129_v7, 5  ;;  %2003 = vmatprep.mubr.msk.bf16.mxu0 %vm845_vm1, %v1907_v11  ;;  %v1040_v25 = vsel %vm2310_vm5, %v2284_v61, %v1039_v39  ;;  %v1440_v60 = vsel %vm2310_vm5, %v1435_v36, %v1439_v28  ;;  %v1921_v28 = vld [vmem:[%s2618_s4] ss:$0 sm:$0xff] }
  0x69   : > { %v1453_v52 = vrot.slane %v1451_v14, 5  ;;  %v1449_v63 = vrot.slane %v1448_v41, 4  ;;  %v1054_v46 = vsel %vm2310_vm5, %v2286_v62, %v1053_v37  ;;  %v1081_v7 = vrot.slane %v1079_v38, 5  ;;  %1974 = vmatmul.mubr.msk.bf16.gmra.mrb[4].mxu1 %vm845_vm1, %v1880_v57 }
  0x6a   : > { %v1887_v55 = vcombine.low %v1040_v25, %v1054_v46  ;;  %v1068_v47 = vsel %vm2310_vm5, %v2291_v2, %v1067_v43  ;;  %v1091_v61 = vrot.slane %v1090_v8, 4  ;;  %v1093_v54 = vshll.u32 %v692_v51, 16 }
  0x6b   : > { %v1454_v12 = vsel %vm2310_vm5, %v1449_v63, %v1453_v52  ;;  %v1105_v62 = vrot.slane %v1104_v58, 4  ;;  %v1107_v13 = vshll.u32 %v694_v56, 16  ;;  %v1118_v16 = vor.u32 %v2356_v5, %v2349_v0 }
  0x6c   : > { %v1908_v2 = vcombine.low %v1440_v60, %v1454_v12  ;;  %1979 = vmatprep.mubr.msk.bf16.mxu1 %vm845_vm1, %v1887_v55  ;;  %v1082_v21 = vsel %vm2310_vm5, %v2306_v17, %v1081_v7  ;;  %v1095_v24 = vrot.slane %v1093_v54, 5  ;;  %v1121_v8 = vshll.u32 %v696_v3, 16 }
  0x6d   : > { %v1109_v19 = vrot.slane %v1107_v13, 5  ;;  %v1132_v6 = vor.u32 %v1131_v53, %v2377_v32  ;;  %v1135_v31 = vshll.u32 %v698_v9, 16  ;;  %v1888_v0 = vcombine.low %v1068_v47, %v1082_v21 }
  0x6e   : > { %2004 = vmatmul.mubr.msk.bf16.gmra.mrb[4].mxu0 %vm845_vm1, %v1908_v2  ;;  %v1096_v48 = vsel %vm2310_vm5, %v1091_v61, %v1095_v24  ;;  %v1119_v57 = vrot.slane %v1118_v16, 4  ;;  %v1123_v17 = vrot.slane %v1121_v8, 5  ;;  %v1914_v32 = vcombine.low %v2437_v4, %v2447_v20 }
  0x6f   : > { %2009 = vmatprep.mubr.msk.bf16.mxu0 %vm845_vm1, %v1913_v59  ;;  %v1110_v5 = vsel %vm2310_vm5, %v1105_v62, %v1109_v19  ;;  %v1133_v40 = vrot.slane %v1132_v6, 4  ;;  %v1137_v50 = vrot.slane %v1135_v31, 5  ;;  %v1915_v26 = vcombine.low %v2471_v49, %v2480_v10 }
  0x70   : > { %v1889_v58 = vcombine.low %v1096_v48, %v1110_v5  ;;  %v1124_v29 = vsel %vm2310_vm5, %v1119_v57, %v1123_v17  ;;  %v1916_v4 = vcombine.low %v2494_v44, %v2498_v45 }
  0x71   : > { %1980 = vmatmul.mubr.msk.bf16.vlgmr.msra.gmra.mrb[0].mxu1 %vm845_vm1, %v1888_v0  ;;  %v1138_v42 = vsel %vm2310_vm5, %v1133_v40, %v1137_v50 }
  0x72   : > { %1983 = vmatprep.mubr.msk.bf16.mxu1 %vm845_vm1, %v1889_v58  ;;  %v1890_v27 = vcombine.low %v1124_v29, %v1138_v42 }
  0x76   : > { %2010 = vmatmul.mubr.msk.bf16.vlgmr.msra.gmra.mrb[0].mxu0 %vm845_vm1, %v1914_v32 }
  0x77   : > { %2013 = vmatprep.mubr.msk.bf16.mxu0 %vm845_vm1, %v1915_v26 }
  0x79   : > { %1984 = vmatmul.mubr.msk.bf16.gmra.mrb[4].mxu1 %vm845_vm1, %v1890_v27 }
  0x7e   : > { %2014 = vmatmul.mubr.msk.bf16.gmra.mrb[4].mxu0 %vm845_vm1, %v1916_v4 }
 0x144   : > { %v1981_v20 = vpop.f32.mrb[0].mxu1 }
 0x145   : > { %v1204_v49 = vpop.f32.mrb[1].mxu1 }
 0x146   : > { %v1982_v18 = vpop.f32.mrb[2].mxu1 }
 0x147   : > { %v1207_v30 = vpop.f32.mrb[3].mxu1 }
 0x149   : > { %v2011_v10 = vpop.f32.mrb[0].mxu0 }
 0x14a   : > { %v1620_v33 = vpop.f32.mrb[1].mxu0  ;;  %v2017_v23 = vadd.f32 %v2011_v10, %v1981_v20 }
 0x14b   : > { %v2012_v44 = vpop.f32.mrb[2].mxu0  ;;  %v2018_v45 = vadd.f32 %v1620_v33, %v1204_v49 }
 0x14c   : > { %v1623_v34 = vpop.f32.mrb[3].mxu0  ;;  %v1668_v35 = vadd.f32 %v2017_v23, %v1921_v28  ;;  %v2019_v15 = vadd.f32 %v2012_v44, %v1982_v18  ;;  %v1985_v36 = vpop.f32.mrb[4].mxu1 }
 0x14d   : > { %v1666_v22 = vadd.f32 %v2018_v45, %v1921_v28  ;;  %v2020_v1 = vadd.f32 %v1623_v34, %v1207_v30  ;;  %v1220_v39 = vpop.f32.mrb[5].mxu1 }
 0x14e   : > { %1676 = vst [vmem:[%s2589_s10 + $0x10] sm:$0xff] %v1668_v35  ;;  %v1669_v11 = vadd.f32 %v2019_v15, %v1921_v28  ;;  %v1986_v41 = vpop.f32.mrb[6].mxu1 }
 0x14f   : > { %1674 = vst [vmem:[%s2589_s10] sm:$0xff] %v1666_v22  ;;  %v1667_v14 = vadd.f32 %v2020_v1, %v1921_v28  ;;  %v1223_v43 = vpop.f32.mrb[7].mxu1 }
 0x150   : > { %1677 = vst [vmem:[%s2589_s10 + $0x18] sm:$0xff] %v1669_v11 }
 0x151   : > { %v2015_v37 = vpop.f32.mrb[4].mxu0  ;;  %1675 = vst [vmem:[%s2589_s10 + $0x8] sm:$0xff] %v1667_v14 }
 0x152   : > { %v1636_v38 = vpop.f32.mrb[5].mxu0  ;;  %v2021_v51 = vadd.f32 %v2015_v37, %v1985_v36 }
 0x153   : > { %v2016_v53 = vpop.f32.mrb[6].mxu0  ;;  %v2022_v52 = vadd.f32 %v1636_v38, %v1220_v39 }
 0x154   : > { %v1639_v59 = vpop.f32.mrb[7].mxu0  ;;  %v1672_v25 = vadd.f32 %v2021_v51, %v1921_v28  ;;  %v2023_v56 = vadd.f32 %v2016_v53, %v1986_v41 }
 0x155   : > { %v1670_v60 = vadd.f32 %v2022_v52, %v1921_v28  ;;  %v2024_v63 = vadd.f32 %v1639_v59, %v1223_v43 }
 0x156   : > { %1680 = vst [vmem:[%s2589_s10 + $0x30] sm:$0xff] %v1672_v25  ;;  %v1673_v46 = vadd.f32 %v2023_v56, %v1921_v28 }
 0x157   : > { %1678 = vst [vmem:[%s2589_s10 + $0x20] sm:$0xff] %v1670_v60  ;;  %v1671_v7 = vadd.f32 %v2024_v63, %v1921_v28 }
 0x158   : > { %1681 = vst [vmem:[%s2589_s10 + $0x38] sm:$0xff] %v1673_v46 }
 0x159   : > { %1679 = vst [vmem:[%s2589_s10 + $0x28] sm:$0xff] %v1671_v7 }
 0x15a PF: > { %s15_s22 = sadd.s32 1, %s2146_s22   ;;  %s2625_s18 = smov %s2134_s19 }
 0x15b   : > { %p12_p10 = scmp.ge.s32.totalorder %s15_s22, 4   ;;  %s2626_s19 = smov %s2217_s27 }
 0x15c   : > { %s2627_s20 = smov %s2142_s21  ;;  %s2628_s21 = smov %s2630_s23 }
 0x15d   :  { %14 = sbr.rel (!%p12_p10) target bundleno = 3 (0x3), region = 221 }

</bundles_post_ra>
